<compile_context>
chip_gen: v7x
topology: tpu7x:2x2x1
jax: 0.10.0
libtpu: 0.0.40
codegen_flags: <defaults>
</compile_context>

<pallas_src>
import functools

import jax
import jax.numpy as jnp
from jax.experimental import pallas as pl
from jax.experimental.pallas import tpu as pltpu

_LANE = 128
_SUBLANE = 8


def _round_up(x, m):
    return (x + m - 1) // m * m


@functools.lru_cache(maxsize=None)
def _vmem_budget():
    """Returns (per-step tile budget, vmem_limit cap), derived from the chip."""
    try:
        cap = int(getattr(pltpu.get_tpu_info(), "vmem_capacity_bytes", 0))
    except Exception:  # defensive: fall back to the smallest current part
        cap = 0
    if cap <= 0:
        cap = 64 * 2**20  # conservative default (v7x per-TensorCore VMEM)
    # Leave headroom for Mosaic internal scratch / semaphores, then a bit more
    # slack between the tile working set and the scoped-VMEM limit.
    vmem_limit_cap = max(32 * 2**20, cap - 12 * 2**20)
    tile_budget = max(24 * 2**20, vmem_limit_cap - 8 * 2**20)
    return tile_budget, vmem_limit_cap


# ------------------------------- kernels ------------------------------------


def _encode_kernel_resident(x_ref, w_ref, b_ref, o_ref):
    """Weight fully resident: one matmul + normalize per batch tile, no scratch."""
    x = x_ref[...].astype(w_ref.dtype)            # VPU cast (no-op if same dtype)
    y = jnp.dot(x, w_ref[...], preferred_element_type=jnp.float32) + b_ref[...]
    sq = jnp.sum(y * y, axis=-1, keepdims=True)
    inv = jax.lax.rsqrt(jnp.maximum(sq, 1e-24))   # == 1 / max(||y||, 1e-12)
    o_ref[...] = (y * inv).astype(o_ref.dtype)


def _encode_kernel_tiled(x_ref, w_ref, b_ref, o_ref, acc_ref):
    """K-tiled: f32 accumulator in VMEM; bias folded into the k == 0 init."""
    k = pl.program_id(1)

    @pl.when(k == 0)
    def _init():
        acc_ref[...] = jnp.broadcast_to(b_ref[...], acc_ref.shape)

    x = x_ref[...].astype(w_ref.dtype)
    acc_ref[...] += jnp.dot(x, w_ref[...], preferred_element_type=jnp.float32)

    @pl.when(k == pl.num_programs(1) - 1)
    def _finalize():
        y = acc_ref[...]
        sq = jnp.sum(y * y, axis=-1, keepdims=True)
        inv = jax.lax.rsqrt(jnp.maximum(sq, 1e-24))
        o_ref[...] = (y * inv).astype(o_ref.dtype)


# ------------------------------- wrapper ------------------------------------


@functools.partial(jax.jit, static_argnames=("n_valid", "block_k", "block_b"))
def _encode(img, w, b, *, n_valid, block_k, block_b=None):
    """img: [B, K] (any float dtype); w: [k_pad, n_pad] (pre-cast/padded);
    b: [1, n_pad] f32 (pre-padded).  Returns [B, n_valid] in img.dtype."""
    B, K = img.shape
    k_pad, n_pad = w.shape
    out_dtype = img.dtype
    x_bytes = jnp.dtype(img.dtype).itemsize
    w_bytes = jnp.dtype(w.dtype).itemsize
    out_bytes = jnp.dtype(out_dtype).itemsize

    resident = block_k >= k_pad
    if resident:
        block_k = k_pad
    tile_budget, vmem_cap = _vmem_budget()

    # ---- batch tile: largest aligned tile that fits the VMEM budget ----
    align = 16 if w_bytes <= 2 else _SUBLANE       # bf16 vregs pack 16 sublanes
    if block_b is None:
        if resident:
            fixed = k_pad * n_pad * w_bytes + n_pad * 4              # 1-buf w + bias
            per_row = 2 * k_pad * x_bytes + 2 * n_pad * out_bytes    # x + out (2-buf)
        else:
            fixed = 2 * block_k * n_pad * w_bytes + n_pad * 4
            per_row = (2 * block_k * x_bytes + 2 * n_pad * out_bytes
                       + n_pad * 4)                                  # + f32 accumulator
        rows = (tile_budget - fixed) // per_row
        rows = max(align, (rows // align) * align)
        block_b = min(rows, _round_up(B, align))
        # Keep >= 2 batch blocks for big batches so the v7x megacore can shard
        # the "parallel" axis (negligible grid-step cost on single-core parts).
        if block_b >= B and B >= 512:
            block_b = _round_up(-(-B // 2), align)
        block_b = max(align, block_b)
    b_pad = _round_up(B, block_b)

    # ---- pad the activation only when needed (cast happens inside the kernel)
    x = img
    if b_pad != B or k_pad != K:
        x = jnp.pad(x, ((0, b_pad - B), (0, k_pad - K)))

    n_b = b_pad // block_b
    n_k = k_pad // block_k

    if resident:
        grid = (n_b,)
        in_specs = [
            pl.BlockSpec((block_b, k_pad), lambda i: (i, 0)),
            # Constant blocks: single buffer (no wasted double-buffer VMEM).
            pl.BlockSpec((k_pad, n_pad), lambda i: (0, 0),
                         pipeline_mode=pl.Buffered(1)),
            pl.BlockSpec((1, n_pad), lambda i: (0, 0),
                         pipeline_mode=pl.Buffered(1)),
        ]
        out_specs = pl.BlockSpec((block_b, n_pad), lambda i: (i, 0))
        scratch_shapes = []
        kernel = _encode_kernel_resident
        dims = ("parallel",)
        vmem_est = (k_pad * n_pad * w_bytes + n_pad * 4
                    + 2 * block_b * k_pad * x_bytes
                    + 2 * block_b * n_pad * out_bytes)
        w_hbm = k_pad * n_pad * w_bytes
    else:
        # Deeper weight buffering hides the big (block_k x n_pad) DMA when the
        # batch tile (and hence the MXU step) is small, if VMEM allows.
        w_bufs = 3 if (block_b < 128 and
                       (3 * block_k * n_pad * w_bytes
                        + 2 * block_b * block_k * x_bytes
                        + 2 * block_b * n_pad * out_bytes
                        + block_b * n_pad * 4) <= tile_budget) else 2
        grid = (n_b, n_k)
        in_specs = [
            pl.BlockSpec((block_b, block_k), lambda i, k: (i, k)),
            pl.BlockSpec((block_k, n_pad), lambda i, k: (k, 0),
                         pipeline_mode=pl.Buffered(w_bufs)),
            pl.BlockSpec((1, n_pad), lambda i, k: (0, 0),
                         pipeline_mode=pl.Buffered(1)),
        ]
        out_specs = pl.BlockSpec((block_b, n_pad), lambda i, k: (i, 0))
        scratch_shapes = [pltpu.VMEM((block_b, n_pad), jnp.float32)]
        kernel = _encode_kernel_tiled
        dims = ("parallel", "arbitrary")
        vmem_est = (w_bufs * block_k * n_pad * w_bytes + n_pad * 4
                    + 2 * block_b * block_k * x_bytes
                    + 2 * block_b * n_pad * out_bytes
                    + block_b * n_pad * 4)
        w_hbm = n_b * k_pad * n_pad * w_bytes   # weight re-streamed per batch block

    vmem_limit = int(min(vmem_cap, max(32 * 2**20, vmem_est * 5 // 4)))

    cost = pl.CostEstimate(
        flops=2 * b_pad * k_pad * n_pad,
        transcendentals=b_pad,  # one rsqrt per row
        bytes_accessed=(b_pad * k_pad * x_bytes + w_hbm
                        + b_pad * n_pad * out_bytes),
    )

    out = pl.pallas_call(
        kernel,
        out_shape=jax.ShapeDtypeStruct((b_pad, n_pad), out_dtype),
        grid_spec=pltpu.PrefetchScalarGridSpec(
            num_scalar_prefetch=0,
            grid=grid,
            in_specs=in_specs,
            out_specs=out_specs,
            scratch_shapes=scratch_shapes,
        ),
        compiler_params=pltpu.CompilerParams(
            dimension_semantics=dims,
            vmem_limit_bytes=vmem_limit,
        ),
        cost_estimate=cost,
    )(x, w, b)

    if b_pad != B or n_pad != n_valid:
        out = out[:B, :n_valid]
    return out


class ImageEncoder:
    """Pallas port of the PyTorch ImageEncoder: Linear(size_target -> size) + L2 norm.

    Parameter cast + lane-padding happens ONCE here (hoisted out of the per-call
    hot path); __call__ only pads the activation when strictly necessary and
    casts it to the compute dtype inside the kernel.
    """

    def __init__(self, weight, bias, *, compute_dtype=jnp.bfloat16, block_k=None):
        # weight: [size_target, size]  (i.e. torch `Encoder.weight.T`), bias: [size]
        K, N = weight.shape
        self.size_target, self.size = K, N
        compute_dtype = jnp.dtype(compute_dtype)
        w_bytes = compute_dtype.itemsize
        n_pad = _round_up(N, _LANE)

        tile_budget, _ = _vmem_budget()
        if block_k is None:
            # Keep the whole (single-buffered) weight resident when it leaves
            # room for activation / output tiles; otherwise tile K with blocks
            # sized so a double-buffered weight block is ~half the budget.
            if K * n_pad * w_bytes <= int(tile_budget * 0.65):
                block_k = K
            else:
                bk = (tile_budget // 2) // (2 * n_pad * w_bytes)
                block_k = max(512, (bk // _LANE) * _LANE)
        block_k = min(block_k, K)
        k_pad = K if block_k == K else _round_up(K, block_k)
        self.block_k, self.k_pad, self.n_pad = block_k, k_pad, n_pad

        w = weight.astype(compute_dtype)
        if k_pad != K or n_pad != N:
            w = jnp.pad(w, ((0, k_pad - K), (0, n_pad - N)))
        b2 = bias.reshape(1, N).astype(jnp.float32)
        if n_pad != N:
            b2 = jnp.pad(b2, ((0, 0), (0, n_pad - N)))
        # Materialize the prepared parameters once.
        self.weight = jax.block_until_ready(w)
        self.bias = jax.block_until_ready(b2)

    def __call__(self, img, *, block_b=None):
        return _encode(img, self.weight, self.bias,
                       n_valid=self.size, block_k=self.block_k, block_b=block_b)


def reference(img, w, b):
    y = img.astype(jnp.float32) @ w.astype(jnp.float32) + b.astype(jnp.float32)
    norm = jnp.maximum(jnp.linalg.norm(y, axis=1, keepdims=True), 1e-12)
    return (y / norm).astype(img.dtype)


if __name__ == "__main__":
    key = jax.random.PRNGKey(0)

    # --- main test: module-consistent small shapes (batch=8, in=32, out=64) ---
    B, size_target, size = 8, 32, 64
    k_img, k_w, k_b = jax.random.split(key, 3)
    img = jax.random.normal(k_img, (B, size_target), dtype=jnp.float32)
    # nn.Linear(size_target, size): torch weight is [size, size_target]; store W.T.
    w = (jax.random.normal(k_w, (size, size_target), dtype=jnp.float32) * 0.1).T
    b = jax.random.normal(k_b, (size,), dtype=jnp.float32) * 0.01
    ref = reference(img, w, b)

    # bf16-MXU fast path (weight resident, no accumulator scratch).
    enc_bf16 = ImageEncoder(w, b)  # default compute_dtype = bfloat16
    out_bf16 = jax.block_until_ready(enc_bf16(img))
    assert out_bf16.shape == (B, size)
    assert jnp.allclose(out_bf16, ref, atol=2e-2, rtol=2e-2), (
        f"bf16 path max err {jnp.max(jnp.abs(out_bf16 - ref))}")

    # f32-compute path: tight check of the math (padding, bias, norm).
    enc_f32 = ImageEncoder(w, b, compute_dtype=jnp.float32)
    out_f32 = jax.block_until_ready(enc_f32(img))
    assert jnp.allclose(out_f32, ref, atol=1e-5, rtol=1e-5), (
        f"f32 path max err {jnp.max(jnp.abs(out_f32 - ref))}")

    # --- ragged shapes on the resident path (B, K, N not lane/sublane aligned) ---
    B2, K2, N2 = 40, 48, 200
    k_img2, k_w2, k_b2 = jax.random.split(jax.random.PRNGKey(1), 3)
    img2 = jax.random.normal(k_img2, (B2, K2), dtype=jnp.float32)
    w2 = jax.random.normal(k_w2, (K2, N2), dtype=jnp.float32) * 0.1
    b2 = jax.random.normal(k_b2, (N2,), dtype=jnp.float32) * 0.01
    ref2 = reference(img2, w2, b2)
    out2 = jax.block_until_ready(
        ImageEncoder(w2, b2, compute_dtype=jnp.float32)(img2))
    assert out2.shape == (B2, N2)
    assert jnp.allclose(out2, ref2, atol=1e-5, rtol=1e-5), (
        f"ragged resident path max err {jnp.max(jnp.abs(out2 - ref2))}")

    # --- forced K-tiled path (accumulator + bias-folded init + deep w buffer) ---
    B3, K3, N3 = 40, 256, 200
    k_img3, k_w3, k_b3 = jax.random.split(jax.random.PRNGKey(2), 3)
    img3 = jax.random.normal(k_img3, (B3, K3), dtype=jnp.float32)
    w3 = jax.random.normal(k_w3, (K3, N3), dtype=jnp.float32) * 0.1
    b3 = jax.random.normal(k_b3, (N3,), dtype=jnp.float32) * 0.01
    ref3 = reference(img3, w3, b3)
    out3 = jax.block_until_ready(
        ImageEncoder(w3, b3, compute_dtype=jnp.float32, block_k=128)(
            img3, block_b=16))
    assert out3.shape == (B3, N3)
    assert jnp.allclose(out3, ref3, atol=1e-4, rtol=1e-4), (
        f"K-tiled path max err {jnp.max(jnp.abs(out3 - ref3))}")

    print("KERNEL_OK")
</pallas_src>

<mosaic_0001>
module attributes {stable_mosaic.version = 11 : i64} {
  func.func @_encode_kernel_resident(%arg0: i32, %arg1: memref<16x32xf32, #tpu.memory_space<vmem>>, %arg2: memref<32x128xbf16, #tpu.memory_space<vmem>>, %arg3: memref<1x128xf32, #tpu.memory_space<vmem>>, %arg4: memref<16x128xf32, #tpu.memory_space<vmem>>) attributes {dimension_semantics = [#tpu.dimension_semantics<parallel>], iteration_bounds = array<i64: 1>, scalar_prefetch = 0 : i64, scratch_operands = 0 : i64, tpu.core_type = #tpu.core_type<tc>, window_params = [{transform_indices = @transform_0, window_bounds = array<i64: 16, 32>}, {pipeline_mode = #tpu.pipeline_mode<synchronous>, transform_indices = @transform_1, window_bounds = array<i64: 32, 128>}, {pipeline_mode = #tpu.pipeline_mode<synchronous>, transform_indices = @transform_2, window_bounds = array<i64: 1, 128>}, {transform_indices = @transform_3, window_bounds = array<i64: 16, 128>}]} {
    %c0 = arith.constant 0 : index
    %c0_0 = arith.constant 0 : index
    %0 = vector.load %arg1[%c0, %c0_0] : memref<16x32xf32, #tpu.memory_space<vmem>>, vector<16x32xf32>
    %1 = arith.truncf %0 : vector<16x32xf32> to vector<16x32xbf16>
    %c0_1 = arith.constant 0 : index
    %c0_2 = arith.constant 0 : index
    %2 = vector.load %arg2[%c0_1, %c0_2] : memref<32x128xbf16, #tpu.memory_space<vmem>>, vector<32x128xbf16>
    %cst = arith.constant dense<0.000000e+00> : vector<16x128xf32>
    %3 = tpu.matmul %1, %2, %cst {dimension_numbers = #tpu.dot_dimension_numbers<[1], [0], [0], [1], [0, 0, 1, 1], [], []>} : vector<16x32xbf16>, vector<32x128xbf16>, vector<16x128xf32> -> vector<16x128xf32>
    %c0_3 = arith.constant 0 : index
    %c0_4 = arith.constant 0 : index
    %4 = vector.load %arg3[%c0_3, %c0_4] : memref<1x128xf32, #tpu.memory_space<vmem>>, vector<1x128xf32>
    %5 = vector.broadcast %4 : vector<1x128xf32> to vector<16x128xf32>
    %6 = arith.addf %3, %5 : vector<16x128xf32>
    %7 = arith.mulf %6, %6 : vector<16x128xf32>
    %cst_5 = arith.constant dense<0.000000e+00> : vector<16xf32>
    %8 = vector.multi_reduction <add>, %7, %cst_5 [1] : vector<16x128xf32> to vector<16xf32>
    %9 = vector.shape_cast %8 : vector<16xf32> to vector<16x1xf32>
    %cst_6 = arith.constant 1.000000e-24 : f32
    %10 = vector.broadcast %cst_6 : f32 to vector<16x1xf32>
    %11 = arith.maximumf %9, %10 : vector<16x1xf32>
    %12 = math.rsqrt %11 : vector<16x1xf32>
    %13 = vector.broadcast %12 : vector<16x1xf32> to vector<16x128xf32>
    %14 = arith.mulf %6, %13 : vector<16x128xf32>
    %c0_7 = arith.constant 0 : index
    %c0_8 = arith.constant 0 : index
    %15 = vector.load %arg4[%c0_7, %c0_8] : memref<16x128xf32, #tpu.memory_space<vmem>>, vector<16x128xf32>
    tpu.vector_store %arg4[%c0_7, %c0_8], %14 {strides = array<i32>} : memref<16x128xf32, #tpu.memory_space<vmem>>, vector<16x128xf32>,
    return
  }
  func.func @transform_0(%arg0: i32) -> (i32, i32) {
    %c0_i32 = arith.constant 0 : i32
    %c0_i32_0 = arith.constant 0 : i32
    return %arg0, %c0_i32 : i32, i32
  }
  func.func @transform_1(%arg0: i32) -> (i32, i32) {
    %c0_i32 = arith.constant 0 : i32
    %c0_i32_0 = arith.constant 0 : i32
    %c0_i32_1 = arith.constant 0 : i32
    return %c0_i32, %c0_i32_0 : i32, i32
  }
  func.func @transform_2(%arg0: i32) -> (i32, i32) {
    %c0_i32 = arith.constant 0 : i32
    %c0_i32_0 = arith.constant 0 : i32
    %c0_i32_1 = arith.constant 0 : i32
    return %c0_i32, %c0_i32_0 : i32, i32
  }
  func.func @transform_3(%arg0: i32) -> (i32, i32) {
    %c0_i32 = arith.constant 0 : i32
    %c0_i32_0 = arith.constant 0 : i32
    return %arg0, %c0_i32 : i32, i32
  }
}

</mosaic_0001>

<bundles_post_ra>
// kernel: _encode.1
= control target key start
LH: loop header
LB: loop body
LE: loop exit
PB: predicated region body
PF: predicated region fallthrough
CT: control target
= control target key end

     0   :  { %v127_v0 = vmov 0.0   ;;  %vm128_vm0 = vmmov 0   ;;  %vm41_vm1 = vcmask 261120   ;;  %s170_s1 = inlined_call_operand.vmem [shape: bf16[32,128], index: 1, kind: input, shape index: {}]   ;;  %s171_s0 = inlined_call_operand.vmem [shape: f32[16,32], index: 0, kind: input, shape index: {}]   ;;  %s172_s2 = inlined_call_operand.vmem [shape: f32[1,128], index: 2, kind: input, shape index: {}]   ;;  %s173_s3 = inlined_call_operand.vmem [shape: f32[16,128], index: 3, kind: output, shape index: {}]  }
   0x1   :  { %111 = vmatprep.subr.bf16.mxu0 %v127_v0  ;;  %v121_v1 = vld [vmem:[%s170_s1] sm:$0xff]   ;;  %115 = vmatprep.mubr.msk.bf16.mxu0 %vm128_vm0, %v127_v0  ;;  %v122_v2 = vld [vmem:[%s170_s1 + $0x8] sm:$0xff]  }
   0x2   :  { %112 = vmatpush3.bf16.msra.mxu0 %v121_v1  ;;  %v15_v3 = vld [vmem:[%s171_s0] sm:$0xff]  ;;  %v16_v4 = vld [vmem:[%s171_s0 + $0x8] sm:$0xff] }
   0x3   :  { %113 = vmatprep.subr.bf16.mxu0 %v127_v0  ;;  %v17_v5 = vpack.c.bf16 %v16_v4, %v15_v3  ;;  %v104_v6 = vld [vmem:[%s172_s2] ss:$0 sm:$0xff] }
   0x6   :  { %114 = vmatpush3.bf16.msra.mxu0 %v122_v2 }
   0x9   :  { %116 = vmatmul.mubr.msk.bf16.vlgmr.msra.gmra.mrb[0].mxu0 %vm41_vm1, %v17_v5 }
  0xdc   :  { %v79_v7 = vpop.f32.mrb[0].mxu0 }
  0xdd   :  { %v80_v8 = vadd.f32 %v104_v6, %v79_v7  ;;  %v117_v9 = vpop.f32.mrb[1].mxu0 }
  0xde   :  { %v82_v10 = vpop.f32.mrb[2].mxu0 }
  0xdf   :  { %v83_v11 = vadd.f32 %v104_v6, %v82_v10  ;;  %v118_v12 = vpop.f32.mrb[3].mxu0  ;;  %v86_v13 = vmul.f32 %v80_v8, %v80_v8 }
  0xe1   :  { %88 = vadd.xlane.f32.xlu0 %v86_v13  ;;  %v87_v14 = vmul.f32 %v83_v11, %v83_v11 }
  0xe5   :  { %90 = vadd.xlane.f32.xlu0 %v87_v14 }
 0x16e   :  { %v89_v15 = vpop.xlane.xlu0 %88 }
 0x16f   :  { %v92_v16 = vmax.f32 %v89_v15, 1e-24 }
 0x171   :  { %123 = vrsqrt.f32 %v92_v16 }
 0x172   :  { %v91_v17 = vpop.xlane.xlu0 %90 }
 0x173   :  { %v93_v18 = vmax.f32 %v91_v17, 1e-24 }
 0x175   :  { %125 = vrsqrt.f32 %v93_v18 }
 0x17b   :  { %v124_v19 = vpop.eup %123 }
 0x17c   :  { %v96_v20 = vmul.f32 %v124_v19, %v80_v8 }
 0x17e   :  { %98 = vst [vmem:[%s173_s3] sm:$0xff] %v96_v20 }
 0x17f   :  { %v126_v21 = vpop.eup %125 }
 0x180   :  { %v97_v22 = vmul.f32 %v126_v21, %v83_v11 }
 0x182   :  { %99 = vst [vmem:[%s173_s3 + $0x8] sm:$0xff] %v97_v22 }

</bundles_post_ra>
